<compile_context>
chip_gen: v7x
topology: tpu7x:2x2x1
jax: 0.10.0
libtpu: 0.0.40
codegen_flags: <defaults>
</compile_context>

<pallas_src>
import functools
from typing import NamedTuple

import jax
import jax.numpy as jnp
from jax import lax
from jax.experimental import pallas as pl
from jax.experimental.pallas import tpu as pltpu


# ------------------------------- helpers -------------------------------------

def _round_up(n, m):
    return ((n + m - 1) // m) * m


class Dims(NamedTuple):
    input_size: int
    hidden_size: int
    num_classes: int
    num_hidden_layers: int
    in_pad: int
    hid_pad: int
    cls_pad: int


_FORI_THRESHOLD = 4      # L > 4 -> fori_loop over layers instead of static unroll
_MAX_BATCH_TILE = 256    # fills the 2x256x256 MXU on v6e/v7x (v5e: 2 passes, still fine)
_NEG_BIAS = -1e30        # padded class columns -> exp() == 0, no softmax mask needed


# ----------------------------- fused kernel ----------------------------------

def make_fused_mlp_kernel(num_hidden_layers, collect_hidden):
    """Build a kernel computing the full MLP forward for one batch tile.

    Inputs (refs):  x, w_embed, b_embed, [w_layers, b_layers,] w_out, b_out
    Outputs (refs): probs [, hidden_stack, logits]
    All arrays are pre-padded: feature dims multiple of 128, batch tile multiple
    of 8.  Padded weight rows/cols and hidden biases are zero (padding
    contributes nothing); padded class columns of b_out hold -1e30 so they
    vanish in the softmax without any in-kernel masking.
    """
    use_fori = num_hidden_layers > _FORI_THRESHOLD

    def kernel(*refs):
        idx = 0
        x_ref = refs[idx]; idx += 1
        we_ref = refs[idx]; idx += 1
        be_ref = refs[idx]; idx += 1
        if num_hidden_layers > 0:
            wl_ref = refs[idx]; idx += 1
            bl_ref = refs[idx]; idx += 1
        wo_ref = refs[idx]; idx += 1
        bo_ref = refs[idx]; idx += 1
        probs_ref = refs[idx]; idx += 1
        if collect_hidden:
            hid_ref = refs[idx]; idx += 1
            logits_ref = refs[idx]; idx += 1

        # embed + relu
        h = jnp.maximum(
            jnp.dot(x_ref[...], we_ref[...], preferred_element_type=jnp.float32)
            + be_ref[...],
            0.0,
        )
        if collect_hidden:
            hid_ref[0] = h

        # hidden layers
        if num_hidden_layers > 0:
            if use_fori:
                def body(i, h):
                    hn = jnp.maximum(
                        jnp.dot(h, wl_ref[i], preferred_element_type=jnp.float32)
                        + bl_ref[i],
                        0.0,
                    )
                    if collect_hidden:
                        hid_ref[i + 1] = hn
                    return hn
                h = lax.fori_loop(0, num_hidden_layers, body, h, unroll=2)
            else:
                for i in range(num_hidden_layers):
                    h = jnp.maximum(
                        jnp.dot(h, wl_ref[i], preferred_element_type=jnp.float32)
                        + bl_ref[i],
                        0.0,
                    )
                    if collect_hidden:
                        hid_ref[i + 1] = h

        # output projection (padded class columns carry a -1e30 bias)
        logits = (
            jnp.dot(h, wo_ref[...], preferred_element_type=jnp.float32)
            + bo_ref[...]
        )
        if collect_hidden:
            logits_ref[...] = logits

        # softmax over the (lane-padded) class dim; padded cols -> exp == 0
        m = jnp.max(logits, axis=-1, keepdims=True)
        e = jnp.exp(logits - m)
        denom = jnp.sum(e, axis=-1, keepdims=True)
        probs_ref[...] = e / denom

    return kernel


# ------------------------------ params ---------------------------------------

def init_params(key, input_size, hidden_size, num_hidden_layers, num_classes):
    """Deterministic init. Weights stored pre-transposed as (in, out), biases as
    (1, out), all padded once to lane/sublane-aligned shapes.  The output bias's
    padded class columns hold -1e30 (softmax mask folded into the bias)."""
    in_pad = _round_up(input_size, 128)
    hid_pad = _round_up(hidden_size, 128)
    cls_pad = _round_up(num_classes, 128)

    def linear_init(k, in_f, out_f, in_p, out_p, bias_pad_value=0.0):
        kw, kb = jax.random.split(k)
        bound = 1.0 / jnp.sqrt(in_f)
        w = jax.random.uniform(kw, (in_f, out_f), jnp.float32, -bound, bound)
        b = jax.random.uniform(kb, (1, out_f), jnp.float32, -bound, bound)
        w = jnp.pad(w, ((0, in_p - in_f), (0, out_p - out_f)))
        b = jnp.pad(b, ((0, 0), (0, out_p - out_f)),
                    constant_values=bias_pad_value)
        return w, b

    keys = jax.random.split(key, num_hidden_layers + 2)
    we, be = linear_init(keys[0], input_size, hidden_size, in_pad, hid_pad)
    if num_hidden_layers > 0:
        layers = [
            linear_init(keys[1 + i], hidden_size, hidden_size, hid_pad, hid_pad)
            for i in range(num_hidden_layers)
        ]
        wl = jnp.stack([w for w, _ in layers])   # (L, hid_pad, hid_pad)
        bl = jnp.stack([b for _, b in layers])   # (L, 1, hid_pad)
    else:
        wl = bl = None
    wo, bo = linear_init(keys[-1], hidden_size, num_classes, hid_pad, cls_pad,
                         bias_pad_value=_NEG_BIAS)

    dims = Dims(input_size, hidden_size, num_classes, num_hidden_layers,
                in_pad, hid_pad, cls_pad)
    return {"we": we, "be": be, "wl": wl, "bl": bl, "wo": wo, "bo": bo,
            "dims": dims}


# ------------------------------ forward --------------------------------------

@functools.partial(jax.jit, static_argnames=("dims", "hidden_states"))
def _forward(x, we, be, wl, bl, wo, bo, *, dims, hidden_states):
    batch, in_f = x.shape
    L = dims.num_hidden_layers

    # Batch tile: cap at 256 rows (fills v6e/v7x MXU); tiny batches -> one tile.
    if batch >= _MAX_BATCH_TILE:
        tm = _MAX_BATCH_TILE
    else:
        tm = _round_up(max(batch, 8), 8)
    b_pad = _round_up(max(batch, tm), tm)
    grid = (b_pad // tm,)

    x_p = jnp.pad(x.astype(jnp.float32),
                  ((0, b_pad - batch), (0, dims.in_pad - in_f)))

    inputs = [x_p, we, be]
    in_specs = [
        pl.BlockSpec((tm, dims.in_pad), lambda i: (i, 0)),
        pl.BlockSpec((dims.in_pad, dims.hid_pad), lambda i: (0, 0)),
        pl.BlockSpec((1, dims.hid_pad), lambda i: (0, 0)),
    ]
    if L > 0:
        inputs += [wl, bl]
        in_specs += [
            pl.BlockSpec((L, dims.hid_pad, dims.hid_pad), lambda i: (0, 0, 0)),
            pl.BlockSpec((L, 1, dims.hid_pad), lambda i: (0, 0, 0)),
        ]
    inputs += [wo, bo]
    in_specs += [
        pl.BlockSpec((dims.hid_pad, dims.cls_pad), lambda i: (0, 0)),
        pl.BlockSpec((1, dims.cls_pad), lambda i: (0, 0)),
    ]

    out_shapes = [jax.ShapeDtypeStruct((b_pad, dims.cls_pad), jnp.float32)]
    out_specs = [pl.BlockSpec((tm, dims.cls_pad), lambda i: (i, 0))]
    if hidden_states:
        out_shapes += [
            jax.ShapeDtypeStruct((L + 1, b_pad, dims.hid_pad), jnp.float32),
            jax.ShapeDtypeStruct((b_pad, dims.cls_pad), jnp.float32),
        ]
        out_specs += [
            pl.BlockSpec((L + 1, tm, dims.hid_pad), lambda i: (0, i, 0)),
            pl.BlockSpec((tm, dims.cls_pad), lambda i: (i, 0)),
        ]

    kernel = make_fused_mlp_kernel(L, hidden_states)
    outs = pl.pallas_call(
        kernel,
        out_shape=tuple(out_shapes) if hidden_states else out_shapes[0],
        grid=grid,
        in_specs=in_specs,
        out_specs=tuple(out_specs) if hidden_states else out_specs[0],
        compiler_params=pltpu.CompilerParams(
            dimension_semantics=("parallel",)),
    )(*inputs)

    if not hidden_states:
        return outs[:batch, :dims.num_classes]

    probs_p, hidden_p, logits_p = outs
    probs = probs_p[:batch, :dims.num_classes]
    hs = tuple(hidden_p[i, :batch, :dims.hidden_size] for i in range(L + 1))
    logits = logits_p[:batch, :dims.num_classes]
    # TODO(synk): PyTorch's `output + all_hidden_states` (Tensor + tuple) is not
    # valid tensor arithmetic; we return (probs, *hidden_states, logits) instead.
    return (probs,) + hs + (logits,)


def fully_connected_model(params, x, hidden_states=False):
    """Forward pass matching FullyConnectedModel.forward (single fused, jitted kernel)."""
    return _forward(x, params["we"], params["be"], params["wl"], params["bl"],
                    params["wo"], params["bo"],
                    dims=params["dims"], hidden_states=hidden_states)


# ---------------------------- pure-JAX reference ------------------------------

def _reference(params, x, hidden_states=False):
    d = params["dims"]
    we = params["we"][:d.input_size, :d.hidden_size]
    be = params["be"][:, :d.hidden_size]
    h = jnp.maximum(x @ we + be, 0.0)
    hs = [h]
    for i in range(d.num_hidden_layers):
        wl = params["wl"][i, :d.hidden_size, :d.hidden_size]
        bl = params["bl"][i, :, :d.hidden_size]
        h = jnp.maximum(h @ wl + bl, 0.0)
        hs.append(h)
    wo = params["wo"][:d.hidden_size, :d.num_classes]
    bo = params["bo"][:, :d.num_classes]
    logits = h @ wo + bo
    probs = jax.nn.softmax(logits, axis=-1)
    if hidden_states:
        return (probs,) + tuple(hs) + (logits,)
    return probs


# ---------------------------------- main --------------------------------------

if __name__ == "__main__":
    key = jax.random.PRNGKey(0)
    k_params, k_x, k_params2, k_x2 = jax.random.split(key, 4)

    # --- config 1: the shipped module config ---------------------------------
    # input_size=16, hidden_size=32, num_hidden_layers=2, num_classes=8
    input_size, hidden_size, num_hidden_layers, num_classes = 16, 32, 2, 8
    batch = 2

    params = init_params(k_params, input_size, hidden_size,
                         num_hidden_layers, num_classes)
    x = jax.random.normal(k_x, (batch, input_size), dtype=jnp.float32)

    out = jax.block_until_ready(fully_connected_model(params, x))
    assert out.shape == (batch, num_classes)
    assert jnp.allclose(jnp.sum(out, axis=-1), 1.0, atol=1e-3)

    ref = jax.block_until_ready(_reference(params, x))
    assert jnp.allclose(out, ref, atol=2e-3, rtol=2e-3), "mismatch vs reference"

    outs_hs = jax.block_until_ready(
        fully_connected_model(params, x, hidden_states=True))
    refs_hs = _reference(params, x, hidden_states=True)
    assert len(outs_hs) == 1 + (num_hidden_layers + 1) + 1
    for o, r in zip(outs_hs, refs_hs):
        assert o.shape == r.shape
        assert jnp.allclose(o, r, atol=2e-3, rtol=2e-3), "hidden-states mismatch"

    # --- config 2: exercises the batch grid (2 x 256-row tiles) and the ------
    # --- fori_loop layer path (L=8 > unroll threshold) ------------------------
    params2 = init_params(k_params2, 64, 128, 8, 10)
    x2 = jax.random.normal(k_x2, (300, 64), dtype=jnp.float32)

    out2 = jax.block_until_ready(fully_connected_model(params2, x2))
    ref2 = jax.block_until_ready(_reference(params2, x2))
    assert out2.shape == (300, 10)
    assert jnp.allclose(jnp.sum(out2, axis=-1), 1.0, atol=1e-3)
    assert jnp.allclose(out2, ref2, atol=2e-3, rtol=2e-3), "mismatch (large cfg)"

    outs2_hs = jax.block_until_ready(
        fully_connected_model(params2, x2, hidden_states=True))
    refs2_hs = _reference(params2, x2, hidden_states=True)
    assert len(outs2_hs) == 1 + (8 + 1) + 1
    for o, r in zip(outs2_hs, refs2_hs):
        assert o.shape == r.shape
        assert jnp.allclose(o, r, atol=2e-3, rtol=2e-3), "hidden-states mismatch (large cfg)"

    print("KERNEL_OK")
</pallas_src>

<mosaic_0001>
module attributes {stable_mosaic.version = 11 : i64} {
  func.func @kernel(%arg0: i32, %arg1: memref<8x128xf32, #tpu.memory_space<vmem>>, %arg2: memref<128x128xf32, #tpu.memory_space<vmem>>, %arg3: memref<1x128xf32, #tpu.memory_space<vmem>>, %arg4: memref<2x128x128xf32, #tpu.memory_space<vmem>>, %arg5: memref<2x1x128xf32, #tpu.memory_space<vmem>>, %arg6: memref<128x128xf32, #tpu.memory_space<vmem>>, %arg7: memref<1x128xf32, #tpu.memory_space<vmem>>, %arg8: memref<8x128xf32, #tpu.memory_space<vmem>>) attributes {dimension_semantics = [#tpu.dimension_semantics<parallel>], iteration_bounds = array<i64: 1>, scalar_prefetch = 0 : i64, scratch_operands = 0 : i64, tpu.core_type = #tpu.core_type<tc>, window_params = [{transform_indices = @transform_0, window_bounds = array<i64: 8, 128>}, {pipeline_mode = #tpu.pipeline_mode<synchronous>, transform_indices = @transform_1, window_bounds = array<i64: 128, 128>}, {pipeline_mode = #tpu.pipeline_mode<synchronous>, transform_indices = @transform_2, window_bounds = array<i64: 1, 128>}, {pipeline_mode = #tpu.pipeline_mode<synchronous>, transform_indices = @transform_3, window_bounds = array<i64: 2, 128, 128>}, {pipeline_mode = #tpu.pipeline_mode<synchronous>, transform_indices = @transform_4, window_bounds = array<i64: 2, 1, 128>}, {pipeline_mode = #tpu.pipeline_mode<synchronous>, transform_indices = @transform_5, window_bounds = array<i64: 128, 128>}, {pipeline_mode = #tpu.pipeline_mode<synchronous>, transform_indices = @transform_6, window_bounds = array<i64: 1, 128>}, {transform_indices = @transform_7, window_bounds = array<i64: 8, 128>}]} {
    %c0 = arith.constant 0 : index
    %c0_0 = arith.constant 0 : index
    %0 = vector.load %arg1[%c0, %c0_0] : memref<8x128xf32, #tpu.memory_space<vmem>>, vector<8x128xf32>
    %c0_1 = arith.constant 0 : index
    %c0_2 = arith.constant 0 : index
    %1 = vector.load %arg2[%c0_1, %c0_2] : memref<128x128xf32, #tpu.memory_space<vmem>>, vector<128x128xf32>
    %cst = arith.constant dense<0.000000e+00> : vector<8x128xf32>
    %2 = tpu.matmul %0, %1, %cst {dimension_numbers = #tpu.dot_dimension_numbers<[1], [0], [0], [1], [0, 0, 1, 1], [], []>} : vector<8x128xf32>, vector<128x128xf32>, vector<8x128xf32> -> vector<8x128xf32>
    %c0_3 = arith.constant 0 : index
    %c0_4 = arith.constant 0 : index
    %3 = vector.load %arg3[%c0_3, %c0_4] : memref<1x128xf32, #tpu.memory_space<vmem>>, vector<1x128xf32>
    %4 = vector.broadcast %3 : vector<1x128xf32> to vector<8x128xf32>
    %5 = arith.addf %2, %4 : vector<8x128xf32>
    %cst_5 = arith.constant 0.000000e+00 : f32
    %6 = vector.broadcast %cst_5 : f32 to vector<8x128xf32>
    %7 = arith.maximumf %5, %6 : vector<8x128xf32>
    %c0_6 = arith.constant 0 : index
    %c0_7 = arith.constant 0 : index
    %c0_8 = arith.constant 0 : index
    %8 = vector.load %arg4[%c0_6, %c0_7, %c0_8] : memref<2x128x128xf32, #tpu.memory_space<vmem>>, vector<1x128x128xf32>
    %9 = vector.shape_cast %8 : vector<1x128x128xf32> to vector<128x128xf32>
    %cst_9 = arith.constant dense<0.000000e+00> : vector<8x128xf32>
    %10 = tpu.matmul %7, %9, %cst_9 {dimension_numbers = #tpu.dot_dimension_numbers<[1], [0], [0], [1], [0, 0, 1, 1], [], []>} : vector<8x128xf32>, vector<128x128xf32>, vector<8x128xf32> -> vector<8x128xf32>
    %c0_10 = arith.constant 0 : index
    %c0_11 = arith.constant 0 : index
    %c0_12 = arith.constant 0 : index
    %11 = vector.load %arg5[%c0_10, %c0_11, %c0_12] : memref<2x1x128xf32, #tpu.memory_space<vmem>>, vector<1x1x128xf32>
    %12 = vector.shape_cast %11 : vector<1x1x128xf32> to vector<1x128xf32>
    %13 = vector.broadcast %12 : vector<1x128xf32> to vector<8x128xf32>
    %14 = arith.addf %10, %13 : vector<8x128xf32>
    %cst_13 = arith.constant 0.000000e+00 : f32
    %15 = vector.broadcast %cst_13 : f32 to vector<8x128xf32>
    %16 = arith.maximumf %14, %15 : vector<8x128xf32>
    %c1 = arith.constant 1 : index
    %c0_14 = arith.constant 0 : index
    %c0_15 = arith.constant 0 : index
    %17 = vector.load %arg4[%c1, %c0_14, %c0_15] : memref<2x128x128xf32, #tpu.memory_space<vmem>>, vector<1x128x128xf32>
    %18 = vector.shape_cast %17 : vector<1x128x128xf32> to vector<128x128xf32>
    %cst_16 = arith.constant dense<0.000000e+00> : vector<8x128xf32>
    %19 = tpu.matmul %16, %18, %cst_16 {dimension_numbers = #tpu.dot_dimension_numbers<[1], [0], [0], [1], [0, 0, 1, 1], [], []>} : vector<8x128xf32>, vector<128x128xf32>, vector<8x128xf32> -> vector<8x128xf32>
    %c1_17 = arith.constant 1 : index
    %c0_18 = arith.constant 0 : index
    %c0_19 = arith.constant 0 : index
    %20 = vector.load %arg5[%c1_17, %c0_18, %c0_19] : memref<2x1x128xf32, #tpu.memory_space<vmem>>, vector<1x1x128xf32>
    %21 = vector.shape_cast %20 : vector<1x1x128xf32> to vector<1x128xf32>
    %22 = vector.broadcast %21 : vector<1x128xf32> to vector<8x128xf32>
    %23 = arith.addf %19, %22 : vector<8x128xf32>
    %cst_20 = arith.constant 0.000000e+00 : f32
    %24 = vector.broadcast %cst_20 : f32 to vector<8x128xf32>
    %25 = arith.maximumf %23, %24 : vector<8x128xf32>
    %c0_21 = arith.constant 0 : index
    %c0_22 = arith.constant 0 : index
    %26 = vector.load %arg6[%c0_21, %c0_22] : memref<128x128xf32, #tpu.memory_space<vmem>>, vector<128x128xf32>
    %cst_23 = arith.constant dense<0.000000e+00> : vector<8x128xf32>
    %27 = tpu.matmul %25, %26, %cst_23 {dimension_numbers = #tpu.dot_dimension_numbers<[1], [0], [0], [1], [0, 0, 1, 1], [], []>} : vector<8x128xf32>, vector<128x128xf32>, vector<8x128xf32> -> vector<8x128xf32>
    %c0_24 = arith.constant 0 : index
    %c0_25 = arith.constant 0 : index
    %28 = vector.load %arg7[%c0_24, %c0_25] : memref<1x128xf32, #tpu.memory_space<vmem>>, vector<1x128xf32>
    %29 = vector.broadcast %28 : vector<1x128xf32> to vector<8x128xf32>
    %30 = arith.addf %27, %29 : vector<8x128xf32>
    %cst_26 = arith.constant dense<0xFF800000> : vector<8xf32>
    %31 = vector.multi_reduction <maximumf>, %30, %cst_26 [1] : vector<8x128xf32> to vector<8xf32>
    %32 = vector.shape_cast %31 : vector<8xf32> to vector<8x1xf32>
    %33 = vector.broadcast %32 : vector<8x1xf32> to vector<8x128xf32>
    %34 = arith.subf %30, %33 : vector<8x128xf32>
    %35 = math.exp %34 : vector<8x128xf32>
    %cst_27 = arith.constant dense<0.000000e+00> : vector<8xf32>
    %36 = vector.multi_reduction <add>, %35, %cst_27 [1] : vector<8x128xf32> to vector<8xf32>
    %37 = vector.shape_cast %36 : vector<8xf32> to vector<8x1xf32>
    %38 = vector.broadcast %37 : vector<8x1xf32> to vector<8x128xf32>
    %39 = arith.divf %35, %38 : vector<8x128xf32>
    %c0_28 = arith.constant 0 : index
    %c0_29 = arith.constant 0 : index
    %40 = vector.load %arg8[%c0_28, %c0_29] : memref<8x128xf32, #tpu.memory_space<vmem>>, vector<8x128xf32>
    tpu.vector_store %arg8[%c0_28, %c0_29], %39 {strides = array<i32>} : memref<8x128xf32, #tpu.memory_space<vmem>>, vector<8x128xf32>,
    return
  }
  func.func @transform_0(%arg0: i32) -> (i32, i32) {
    %c0_i32 = arith.constant 0 : i32
    %c0_i32_0 = arith.constant 0 : i32
    return %arg0, %c0_i32 : i32, i32
  }
  func.func @transform_1(%arg0: i32) -> (i32, i32) {
    %c0_i32 = arith.constant 0 : i32
    %c0_i32_0 = arith.constant 0 : i32
    %c0_i32_1 = arith.constant 0 : i32
    return %c0_i32, %c0_i32_0 : i32, i32
  }
  func.func @transform_2(%arg0: i32) -> (i32, i32) {
    %c0_i32 = arith.constant 0 : i32
    %c0_i32_0 = arith.constant 0 : i32
    %c0_i32_1 = arith.constant 0 : i32
    return %c0_i32, %c0_i32_0 : i32, i32
  }
  func.func @transform_3(%arg0: i32) -> (i32, i32, i32) {
    %c0_i32 = arith.constant 0 : i32
    %c0_i32_0 = arith.constant 0 : i32
    %c0_i32_1 = arith.constant 0 : i32
    %c0_i32_2 = arith.constant 0 : i32
    return %c0_i32, %c0_i32_0, %c0_i32_1 : i32, i32, i32
  }
  func.func @transform_4(%arg0: i32) -> (i32, i32, i32) {
    %c0_i32 = arith.constant 0 : i32
    %c0_i32_0 = arith.constant 0 : i32
    %c0_i32_1 = arith.constant 0 : i32
    %c0_i32_2 = arith.constant 0 : i32
    return %c0_i32, %c0_i32_0, %c0_i32_1 : i32, i32, i32
  }
  func.func @transform_5(%arg0: i32) -> (i32, i32) {
    %c0_i32 = arith.constant 0 : i32
    %c0_i32_0 = arith.constant 0 : i32
    %c0_i32_1 = arith.constant 0 : i32
    return %c0_i32, %c0_i32_0 : i32, i32
  }
  func.func @transform_6(%arg0: i32) -> (i32, i32) {
    %c0_i32 = arith.constant 0 : i32
    %c0_i32_0 = arith.constant 0 : i32
    %c0_i32_1 = arith.constant 0 : i32
    return %c0_i32, %c0_i32_0 : i32, i32
  }
  func.func @transform_7(%arg0: i32) -> (i32, i32) {
    %c0_i32 = arith.constant 0 : i32
    %c0_i32_0 = arith.constant 0 : i32
    return %arg0, %c0_i32 : i32, i32
  }
}

</mosaic_0001>

<bundles_post_ra>
// kernel: _forward.1
= control target key start
LH: loop header
LB: loop body
LE: loop exit
PB: predicated region body
PF: predicated region fallthrough
CT: control target
= control target key end

     0   :  { %12 = vsyncpa [#allocation3], 0  ;;  %s1010_s0 = inlined_call_operand.vmem [shape: f32[8,128], index: 0, kind: input, shape index: {}]   ;;  %s1011_s1 = inlined_call_operand.hbm [shape: f32[128,128], index: 1, kind: input, shape index: {}]   ;;  %s1012_s2 = inlined_call_operand.vmem [shape: f32[1,128], index: 2, kind: input, shape index: {}]   ;;  %s1013_s3 = inlined_call_operand.hbm [shape: f32[2,128,128], index: 3, kind: input, shape index: {}]   ;;  %s1014_s4 = inlined_call_operand.vmem [shape: f32[2,1,128], index: 4, kind: input, shape index: {}]   ;;  %s1015_s5 = inlined_call_operand.hbm [shape: f32[128,128], index: 5, kind: input, shape index: {}]   ;;  %s1016_s6 = inlined_call_operand.vmem [shape: f32[1,128], index: 6, kind: input, shape index: {}]   ;;  %s1017_s7 = inlined_call_operand.vmem [shape: f32[8,128], index: 7, kind: output, shape index: {}]  }
   0x1   :  { %13 = vsyncpa [#allocation5], 0  ;;  %s852_s24 = smov [#allocation4]   ;;  %s853_s26 = smov [#allocation2]  }
   0x2   :  { %s35_s25 = sshll.u32 %s852_s24, 4  ;;  %s21_s27 = sshll.u32 %s853_s26, 4  ;;  %s36_s25 = int_to_ptr.vmem [resolvable:$true] %s35_s25  ;;  %s900_s27 = int_to_ptr.vmem [resolvable:$true] %s21_s27 }
   0x3   :  { %s782_s30 = scalar_lea.hbm %s1013_s3, 4096 }
   0x4   :  { %p783_p0 = scmp.ne.s32.totalorder %s1013_s3, %s782_s30  ;;  %p786_p1 = scmp.lt.u32.totalorder %s782_s30, %s1013_s3 }
   0x6   :  { %p788_p2 = pnand %p786_p1, %p783_p0 }
   0x8   :  { %791 = shalt.err (!%p788_p2)
}
   0x9   :  { %s792_s12 = scalar_lea.vmem %s36_s25, 4096  ;;  %p797_p4 = scmp.lt.s32.totalorder %s36_s25, %s36_s25 }
   0xa   :  { %p793_p3 = scmp.ne.s32.totalorder %s36_s25, %s792_s12  ;;  %p798_p5 = scmp.lt.s32.totalorder %s792_s12, %s792_s12 }
   0xc   :  { %p799_p6 = por %p798_p5, %p797_p4 }
   0xe   :  { %p800_p7 = pnand %p799_p6, %p793_p3 }
  0x10   :  { %803 = shalt.err (!%p800_p7)
}
  0x11   :  { %s854_s13 = smov 128   ;;  %s855_s14 = smov 8  }
  0x12   :  { %41 = dma.hbm_to_vmem [thread:$0]  %s1013_s3, 4096, %s36_s25, [#allocation5], %s854_s13, %s854_s13, %s855_s14  }
  0x13   :  { %s804_s19 = scalar_lea.hbm %s1011_s1, 2048 }
  0x14   :  { %p805_p8 = scmp.ne.s32.totalorder %s1011_s1, %s804_s19  ;;  %p808_p9 = scmp.lt.u32.totalorder %s804_s19, %s1011_s1 }
  0x16   :  { %p810_p10 = pnand %p808_p9, %p805_p8 }
  0x18   :  { %813 = shalt.err (!%p810_p10)
}
  0x19   :  { %s814_s24 = scalar_lea.vmem %s900_s27, 2048  ;;  %p819_p12 = scmp.lt.s32.totalorder %s900_s27, %s900_s27 }
  0x1a   :  { %p815_p11 = scmp.ne.s32.totalorder %s900_s27, %s814_s24  ;;  %p820_p13 = scmp.lt.s32.totalorder %s814_s24, %s814_s24 }
  0x1c   :  { %p821_p0 = por %p820_p13, %p819_p12 }
  0x1e   :  { %p822_p1 = pnand %p821_p0, %p815_p11 }
  0x20   :  { %825 = shalt.err (!%p822_p1)
}
  0x21   :  { %27 = dma.hbm_to_vmem [thread:$0]  %s1011_s1, 2048, %s900_s27, [#allocation3], %s854_s13, %s854_s13, %s855_s14  }
  0x22   :  { %s856_s26 = smov [#allocation6]   ;;  %s826_s8 = scalar_lea.hbm %s1015_s5, 2048 }
  0x23   :  { %s49_s28 = sshll.u32 %s856_s26, 4  ;;  %p827_p2 = scmp.ne.s32.totalorder %s1015_s5, %s826_s8  ;;  %s50_s28 = int_to_ptr.vmem [resolvable:$true] %s49_s28 }
  0x24   :  { %p830_p3 = scmp.lt.u32.totalorder %s826_s8, %s1015_s5 }
  0x26   :  { %p832_p4 = pnand %p830_p3, %p827_p2 }
  0x28   :  { %835 = shalt.err (!%p832_p4)
}
  0x29   :  { %s836_s15 = scalar_lea.vmem %s50_s28, 2048  ;;  %p841_p6 = scmp.lt.s32.totalorder %s50_s28, %s50_s28 }
  0x2a   :  { %p837_p5 = scmp.ne.s32.totalorder %s50_s28, %s836_s15  ;;  %p842_p7 = scmp.lt.s32.totalorder %s836_s15, %s836_s15 }
  0x2c   :  { %p843_p8 = por %p842_p7, %p841_p6 }
  0x2e   :  { %p844_p9 = pnand %p843_p8, %p837_p5 }
  0x30   :  { %847 = shalt.err (!%p844_p9)
}
  0x31   :  { %55 = dma.hbm_to_vmem [thread:$0]  %s1015_s5, 2048, %s50_s28, [#allocation5], %s854_s13, %s854_s13, %s855_s14  }
  0x32   :  { %848 = dma.done.wait [#allocation3], 2048  }
  0x33   :  { %849 = vsyncadd [#allocation3], 4294965248 }
  0x34   :  { %850 = dma.done.wait [#allocation5], 6144  }
  0x35   :  { %851 = vsyncadd [#allocation5], 4294961152  ;;  %v857_v0 = vmov 0.0|0.0   ;;  %vm858_vm0 = vmmov 0   ;;  %v859_v1 = vmov 0.0   ;;  %v68_v2 = vld [vmem:[#allocation2] sm:$0xff] }
  0x36   :  { %674 = vmatprep.subr.bf16.mxu0 %v857_v0  ;;  %566 = vmatprep.mubr.msk.f32.mxu0 %vm858_vm0, %v859_v1  ;;  %v69_v3 = vld [vmem:[#allocation2 + $0x8] sm:$0xff]  ;;  %v70_v4 = vld [vmem:[#allocation2 + $0x10] sm:$0xff]  ;;  %v71_v6 = vld [vmem:[#allocation2 + $0x18] sm:$0xff] }
  0x37   :  { %698 = vmatprep.subr.bf16.mxu1 %v857_v0  ;;  %601 = vmatprep.mubr.msk.f32.mxu1 %vm858_vm0, %v859_v1  ;;  %v675_v5 = vpack.c.bf16 %v69_v3, %v68_v2  ;;  %v678_v7 = vpack.c.bf16 %v71_v6, %v70_v4  ;;  %v72_v8 = vld [vmem:[#allocation2 + $0x20] sm:$0xff]  ;;  %v73_v9 = vld [vmem:[#allocation2 + $0x28] sm:$0xff]  ;;  %v164_v12 = vld [vmem:[#allocation4 + $0x10] sm:$0xff] }
  0x38   :  { %v162_v10 = vld [vmem:[#allocation4] sm:$0xff]  ;;  %v163_v11 = vld [vmem:[#allocation4 + $0x8] sm:$0xff]  ;;  %v165_v13 = vld [vmem:[#allocation4 + $0x18] sm:$0xff]  ;;  %v681_v14 = vpack.c.bf16 %v73_v9, %v72_v8 }
  0x39   :  { %676 = vmatpush3.bf16.msra.mxu0 %v675_v5  ;;  %v699_v15 = vpack.c.bf16 %v163_v11, %v162_v10  ;;  %v74_v16 = vld [vmem:[#allocation2 + $0x30] sm:$0xff]  ;;  %v75_v17 = vld [vmem:[#allocation2 + $0x38] sm:$0xff]  ;;  %v702_v18 = vpack.c.bf16 %v165_v13, %v164_v12  ;;  %v166_v19 = vld [vmem:[#allocation4 + $0x20] sm:$0xff] }
  0x3a   :  { %677 = vmatprep.subr.bf16.mxu0 %v857_v0  ;;  %v167_v20 = vld [vmem:[#allocation4 + $0x28] sm:$0xff]  ;;  %v684_v21 = vpack.c.bf16 %v75_v17, %v74_v16  ;;  %v76_v22 = vld [vmem:[#allocation2 + $0x40] sm:$0xff]  ;;  %v168_v25 = vld [vmem:[#allocation4 + $0x30] sm:$0xff] }
  0x3b   :  { %700 = vmatpush3.bf16.msra.mxu1 %v699_v15  ;;  %v77_v23 = vld [vmem:[#allocation2 + $0x48] sm:$0xff]  ;;  %v705_v24 = vpack.c.bf16 %v167_v20, %v166_v19  ;;  %v169_v26 = vld [vmem:[#allocation4 + $0x38] sm:$0xff]  ;;  %v78_v28 = vld [vmem:[#allocation2 + $0x50] sm:$0xff] }
  0x3c   :  { %701 = vmatprep.subr.bf16.mxu1 %v857_v0  ;;  %v687_v27 = vpack.c.bf16 %v77_v23, %v76_v22  ;;  %v79_v29 = vld [vmem:[#allocation2 + $0x58] sm:$0xff]  ;;  %v708_v30 = vpack.c.bf16 %v169_v26, %v168_v25  ;;  %v170_v31 = vld [vmem:[#allocation4 + $0x40] sm:$0xff]  ;;  %v171_v32 = vld [vmem:[#allocation4 + $0x48] sm:$0xff] }
  0x3d   :  { %679 = vmatpush3.bf16.msra.mxu0 %v678_v7  ;;  %v690_v33 = vpack.c.bf16 %v79_v29, %v78_v28  ;;  %v80_v34 = vld [vmem:[#allocation2 + $0x60] sm:$0xff]  ;;  %v81_v35 = vld [vmem:[#allocation2 + $0x68] sm:$0xff]  ;;  %v711_v36 = vpack.c.bf16 %v171_v32, %v170_v31  ;;  %v172_v37 = vld [vmem:[#allocation4 + $0x50] sm:$0xff] }
  0x3e   :  { %680 = vmatprep.subr.bf16.mxu0 %v857_v0  ;;  %v173_v38 = vld [vmem:[#allocation4 + $0x58] sm:$0xff]  ;;  %v693_v39 = vpack.c.bf16 %v81_v35, %v80_v34  ;;  %v82_v40 = vld [vmem:[#allocation2 + $0x70] sm:$0xff]  ;;  %v174_v43 = vld [vmem:[#allocation4 + $0x60] sm:$0xff] }
  0x3f   :  { %703 = vmatpush3.bf16.msra.mxu1 %v702_v18  ;;  %v83_v41 = vld [vmem:[#allocation2 + $0x78] sm:$0xff]  ;;  %v714_v42 = vpack.c.bf16 %v173_v38, %v172_v37  ;;  %v175_v44 = vld [vmem:[#allocation4 + $0x68] sm:$0xff]  ;;  %v67_v47 = vld [vmem:[%s1010_s0] sm:$0xff] }
  0x40   :  { %704 = vmatprep.subr.bf16.mxu1 %v857_v0  ;;  %v696_v45 = vpack.c.bf16 %v83_v41, %v82_v40  ;;  %v717_v46 = vpack.c.bf16 %v175_v44, %v174_v43  ;;  %v176_v48 = vld [vmem:[#allocation4 + $0x70] sm:$0xff]  ;;  %v177_v49 = vld [vmem:[#allocation4 + $0x78] sm:$0xff]  ;;  %v257_v51 = vld [vmem:[#allocation4 + $0x80] sm:$0xff] }
  0x41   :  { %682 = vmatpush3.bf16.msra.mxu0 %v681_v14  ;;  %v720_v50 = vpack.c.bf16 %v177_v49, %v176_v48  ;;  %v258_v52 = vld [vmem:[#allocation4 + $0x88] sm:$0xff]  ;;  %v259_v53 = vld [vmem:[#allocation4 + $0x90] sm:$0xff]  ;;  %v260_v55 = vld [vmem:[#allocation4 + $0x98] sm:$0xff] }
  0x42   :  { %683 = vmatprep.subr.bf16.mxu0 %v857_v0  ;;  %v723_v54 = vpack.c.bf16 %v258_v52, %v257_v51  ;;  %v726_v56 = vpack.c.bf16 %v260_v55, %v259_v53  ;;  %v261_v57 = vld [vmem:[#allocation4 + $0xa0] sm:$0xff]  ;;  %v262_v58 = vld [vmem:[#allocation4 + $0xa8] sm:$0xff]  ;;  %v263_v60 = vld [vmem:[#allocation4 + $0xb0] sm:$0xff] }
  0x43   :  { %706 = vmatpush3.bf16.msra.mxu1 %v705_v24  ;;  %v729_v59 = vpack.c.bf16 %v262_v58, %v261_v57  ;;  %v264_v61 = vld [vmem:[#allocation4 + $0xb8] sm:$0xff]  ;;  %v265_v63 = vld [vmem:[#allocation4 + $0xc0] sm:$0xff]  ;;  %v266_v2 = vld [vmem:[#allocation4 + $0xc8] sm:$0xff] }
  0x44   :  { %707 = vmatprep.subr.bf16.mxu1 %v857_v0  ;;  %v732_v62 = vpack.c.bf16 %v264_v61, %v263_v60  ;;  %v735_v3 = vpack.c.bf16 %v266_v2, %v265_v63  ;;  %v267_v4 = vld [vmem:[#allocation4 + $0xd0] sm:$0xff]  ;;  %v268_v5 = vld [vmem:[#allocation4 + $0xd8] sm:$0xff]  ;;  %v269_v7 = vld [vmem:[#allocation4 + $0xe0] sm:$0xff] }
  0x45   :  { %685 = vmatpush3.bf16.msra.mxu0 %v684_v21  ;;  %v738_v6 = vpack.c.bf16 %v268_v5, %v267_v4  ;;  %v270_v8 = vld [vmem:[#allocation4 + $0xe8] sm:$0xff]  ;;  %v461_v10 = vld [vmem:[%s1012_s2] ss:$0 sm:$0xff]  ;;  %v271_v15 = vld [vmem:[#allocation4 + $0xf0] sm:$0xff] }
  0x46   :  { %686 = vmatprep.subr.bf16.mxu0 %v857_v0  ;;  %v741_v9 = vpack.c.bf16 %v270_v8, %v269_v7  ;;  %v272_v16 = vld [vmem:[#allocation4 + $0xf8] sm:$0xff]  ;;  %v352_v18 = vld [vmem:[#allocation6] sm:$0xff]  ;;  %v353_v19 = vld [vmem:[#allocation6 + $0x8] sm:$0xff] }
  0x47   :  { %709 = vmatpush3.bf16.msra.mxu1 %v708_v30  ;;  %v744_v17 = vpack.c.bf16 %v272_v16, %v271_v15  ;;  %v354_v20 = vld [vmem:[#allocation6 + $0x10] sm:$0xff]  ;;  %v747_v21 = vpack.c.bf16 %v353_v19, %v352_v18  ;;  %v355_v22 = vld [vmem:[#allocation6 + $0x18] sm:$0xff]  ;;  %v356_v24 = vld [vmem:[#allocation6 + $0x20] sm:$0xff] }
  0x48   :  { %710 = vmatprep.subr.bf16.mxu1 %v857_v0  ;;  %v750_v23 = vpack.c.bf16 %v355_v22, %v354_v20  ;;  %v357_v25 = vld [vmem:[#allocation6 + $0x28] sm:$0xff]  ;;  %v360_v29 = vld [vmem:[#allocation6 + $0x40] sm:$0xff]  ;;  %v362_v32 = vld [vmem:[#allocation6 + $0x50] sm:$0xff] }
  0x49   :  { %688 = vmatpush3.bf16.msra.mxu0 %v687_v27  ;;  %v753_v26 = vpack.c.bf16 %v357_v25, %v356_v24  ;;  %v359_v27 = vld [vmem:[#allocation6 + $0x38] sm:$0xff]  ;;  %v361_v30 = vld [vmem:[#allocation6 + $0x48] sm:$0xff]  ;;  %v364_v35 = vld [vmem:[#allocation6 + $0x60] sm:$0xff] }
  0x4a   :  { %689 = vmatprep.subr.bf16.mxu0 %v857_v0  ;;  %v759_v31 = vpack.c.bf16 %v361_v30, %v360_v29  ;;  %v462_v38 = vld [vmem:[%s1014_s4] ss:$0 sm:$0xff]  ;;  %v366_v43 = vld [vmem:[#allocation6 + $0x70] sm:$0xff]  ;;  %v367_v44 = vld [vmem:[#allocation6 + $0x78] sm:$0xff] }
  0x4b   :  { %712 = vmatpush3.bf16.msra.mxu1 %v711_v36  ;;  %v365_v36 = vld [vmem:[#allocation6 + $0x68] sm:$0xff] }
  0x4c   :  { %713 = vmatprep.subr.bf16.mxu1 %v857_v0  ;;  %v765_v37 = vpack.c.bf16 %v365_v36, %v364_v35 }
  0x4d   :  { %691 = vmatpush3.bf16.msra.mxu0 %v690_v33  ;;  %v363_v33 = vld [vmem:[#allocation6 + $0x58] sm:$0xff] }
  0x4e   :  { %692 = vmatprep.subr.bf16.mxu0 %v857_v0  ;;  %v762_v34 = vpack.c.bf16 %v363_v33, %v362_v32 }
  0x4f   :  { %715 = vmatpush3.bf16.msra.mxu1 %v714_v42 }
  0x50   :  { %716 = vmatprep.subr.bf16.mxu1 %v857_v0 }
  0x51   :  { %694 = vmatpush3.bf16.msra.mxu0 %v693_v39 }
  0x52   :  { %695 = vmatprep.subr.bf16.mxu0 %v857_v0 }
  0x53   :  { %718 = vmatpush3.bf16.msra.mxu1 %v717_v46  ;;  %v464_v46 = vld [vmem:[%s1014_s4 + $0x1] ss:$0 sm:$0xff] }
  0x54   :  { %719 = vmatprep.subr.bf16.mxu1 %v857_v0 }
  0x55   :  { %697 = vmatpush3.bf16.msra.mxu0 %v696_v45  ;;  %v768_v45 = vpack.c.bf16 %v367_v44, %v366_v43 }
  0x56   :  { %722 = vmatprep.subr.bf16.mxu0 %v857_v0 }
  0x57   :  { %721 = vmatpush3.bf16.msra.mxu1 %v720_v50  ;;  %v465_v50 = vld [vmem:[%s1016_s6] ss:$0 sm:$0xff] }
  0x58   :  { %567 = vmatmul.mubr.f32.vlgmr.msra.gmra.mrb[0].mxu0 %v67_v47  ;;  %746 = vmatprep.subr.bf16.mxu1 %v857_v0 }
  0x59   :  { %636 = vmatprep.mubr.msk.f32.mxu0 %vm858_vm0, %v859_v1  ;;  %724 = vmatpush3.bf16.msra.mxu0 %v723_v54 }
  0x5a   :  { %725 = vmatprep.subr.bf16.mxu0 %v857_v0 }
  0x5d   :  { %727 = vmatpush3.bf16.msra.mxu0 %v726_v56 }
  0x5e   :  { %728 = vmatprep.subr.bf16.mxu0 %v857_v0 }
  0x61   :  { %730 = vmatpush3.bf16.msra.mxu0 %v729_v59 }
  0x62   :  { %731 = vmatprep.subr.bf16.mxu0 %v857_v0 }
  0x65   :  { %733 = vmatpush3.bf16.msra.mxu0 %v732_v62 }
  0x66   :  { %734 = vmatprep.subr.bf16.mxu0 %v857_v0 }
  0x69   :  { %736 = vmatpush3.bf16.msra.mxu0 %v735_v3 }
  0x6a   :  { %737 = vmatprep.subr.bf16.mxu0 %v857_v0 }
  0x6d   :  { %739 = vmatpush3.bf16.msra.mxu0 %v738_v6 }
  0x6e   :  { %740 = vmatprep.subr.bf16.mxu0 %v857_v0 }
  0x71   :  { %742 = vmatpush3.bf16.msra.mxu0 %v741_v9 }
  0x72   :  { %743 = vmatprep.subr.bf16.mxu0 %v857_v0 }
  0x75   :  { %745 = vmatpush3.bf16.msra.mxu0 %v744_v17 }
 0x12b   :  { %v157_v11 = vpop.f32.mrb[0].mxu0 }
 0x12c   :  { %v158_v12 = vadd.f32 %v461_v10, %v157_v11  ;;  %v568_v13 = vpop.f32.mrb[1].mxu0 }
 0x12e   :  { %v161_v14 = vmax.f32 %v158_v12, 0.0 }
 0x130   :  { %602 = vmatmul.mubr.f32.vlgmr.msra.gmra.mrb[0].mxu1 %v161_v14 }
 0x131   :  { %671 = vmatprep.mubr.msk.f32.mxu1 %vm858_vm0, %v859_v1  ;;  %748 = vmatpush3.bf16.msra.mxu1 %v747_v21  ;;  %v358_v1 = vld [vmem:[#allocation6 + $0x30] sm:$0xff] }
 0x132   :  { %749 = vmatprep.subr.bf16.mxu1 %v857_v0  ;;  %v756_v28 = vpack.c.bf16 %v359_v27, %v358_v1 }
 0x135   :  { %751 = vmatpush3.bf16.msra.mxu1 %v750_v23 }
 0x136   :  { %752 = vmatprep.subr.bf16.mxu1 %v857_v0 }
 0x139   :  { %754 = vmatpush3.bf16.msra.mxu1 %v753_v26 }
 0x13a   :  { %755 = vmatprep.subr.bf16.mxu1 %v857_v0 }
 0x13d   :  { %757 = vmatpush3.bf16.msra.mxu1 %v756_v28 }
 0x13e   :  { %758 = vmatprep.subr.bf16.mxu1 %v857_v0 }
 0x141   :  { %760 = vmatpush3.bf16.msra.mxu1 %v759_v31 }
 0x142   :  { %761 = vmatprep.subr.bf16.mxu1 %v857_v0 }
 0x145   :  { %763 = vmatpush3.bf16.msra.mxu1 %v762_v34 }
 0x146   :  { %764 = vmatprep.subr.bf16.mxu1 %v857_v0 }
 0x149   :  { %766 = vmatpush3.bf16.msra.mxu1 %v765_v37 }
 0x14a   :  { %767 = vmatprep.subr.bf16.mxu1 %v857_v0 }
 0x14d   :  { %769 = vmatpush3.bf16.msra.mxu1 %v768_v45 }
 0x203   :  { %v251_v39 = vpop.f32.mrb[0].mxu1 }
 0x204   :  { %v252_v40 = vadd.f32 %v462_v38, %v251_v39  ;;  %v603_v41 = vpop.f32.mrb[1].mxu1 }
 0x206   :  { %v255_v42 = vmax.f32 %v252_v40, 0.0 }
 0x208   :  { %637 = vmatmul.mubr.f32.vlgmr.msra.gmra.mrb[2].mxu0 %v255_v42 }
 0x2db   :  { %v347_v47 = vpop.f32.mrb[2].mxu0 }
 0x2dc   :  { %v348_v48 = vadd.f32 %v464_v46, %v347_v47  ;;  %v638_v0 = vpop.f32.mrb[3].mxu0 }
 0x2de   :  { %v351_v49 = vmax.f32 %v348_v48, 0.0 }
 0x2e0   :  { %672 = vmatmul.mubr.f32.vlgmr.msra.gmra.mrb[2].mxu1 %v351_v49 }
 0x3b3   :  { %v441_v51 = vpop.f32.mrb[2].mxu1 }
 0x3b4   :  { %v442_v52 = vadd.f32 %v465_v50, %v441_v51  ;;  %v673_v53 = vpop.f32.mrb[3].mxu1 }
 0x3b6   :  { %445 = vmax.xlane.f32.xlu0 %v442_v52 }
 0x443   :  { %v446_v54 = vpop.xlane.xlu0 %445 }
 0x444   :  { %v447_v55 = vsub.f32 %v442_v52, %v446_v54 }
 0x446   :  { %v448_v56 = vmul.f32 1.442695, %v447_v55 }
 0x448   :  { %778 = vpow2.f32 %v448_v56 }
 0x452   :  { %v779_v57 = vpop.eup %778 }
 0x453   :  { %450 = vadd.xlane.f32.xlu0 %v779_v57 }
 0x4e0   :  { %v451_v58 = vpop.xlane.xlu0 %450 }
 0x4e1   :  { %780 = vrcp.f32 %v451_v58 }
 0x4eb   :  { %v781_v59 = vpop.eup %780 }
 0x4ec   :  { %v453_v60 = vmul.f32 %v781_v59, %v779_v57 }
 0x4ee   :  { %454 = vst [vmem:[%s1017_s7] sm:$0xff] %v453_v60 }
 0x4ef   :  { %459 = vsyncpa [#allocation3], 1 }
 0x4f0   :  { %460 = vsyncpa [#allocation5], 1 }

</bundles_post_ra>
